<compile_context>
chip_gen: v5e
topology: v5e:2x2
jax: 0.10.0
libtpu: 0.0.40
codegen_flags: <defaults>
</compile_context>

<pallas_src>
import functools

import jax
import jax.numpy as jnp
from jax.experimental import pallas as pl
from jax.experimental.pallas import tpu as pltpu

BN_EPS = 1e-5
VMEM_LIMIT_BYTES = 32 * 1024 * 1024


# ------------------------------ fused kernel --------------------------------


def _make_mlp_kernel(h_sizes):
    """Fully fused MLP kernel for a fixed (static) list of layer widths.

    Refs: (x_ref, w_ref, p_ref, o_ref)
      x_ref : (N, h_sizes[0])                 f32 input
      w_ref : (L, max_fin, max_fout)          packed, pre-transposed weights
      p_ref : (L, 3, max_fout)                rows = [bias, gamma, beta]
      o_ref : (N, h_sizes[-1])                softmax output
    """
    h_sizes = tuple(h_sizes)
    n_layers = len(h_sizes) - 1

    def kernel(x_ref, w_ref, p_ref, o_ref):
        h = x_ref[...]                                    # (N, F0) f32
        for k in range(n_layers):                         # static unroll
            fin, fout = h_sizes[k], h_sizes[k + 1]
            w_k = w_ref[k]                                # (max_fin, max_fout)
            p_k = p_ref[k]                                # (3, max_fout)
            w = w_k[:fin, :fout]                          # static slices
            bias = p_k[0:1, :fout]
            gamma = p_k[1:2, :fout]
            beta = p_k[2:3, :fout]

            # Linear: y = x @ W + b   (MXU, f32 accumulation)
            h = jnp.dot(h, w, preferred_element_type=jnp.float32) + bias
            # ReLU
            h = jnp.maximum(h, 0.0)
            # BatchNorm1d, training-mode batch stats, biased variance,
            # folded into a single per-feature scale/shift.
            mean = jnp.mean(h, axis=0, keepdims=True)
            mean_sq = jnp.mean(h * h, axis=0, keepdims=True)
            var = jnp.maximum(mean_sq - mean * mean, 0.0)
            inv = jax.lax.rsqrt(var + BN_EPS)
            scale = gamma * inv
            shift = beta - mean * scale
            h = h * scale + shift

        # softmax along last dim (numerically stabilized, exact division)
        m = jnp.max(h, axis=-1, keepdims=True)
        e = jnp.exp(h - m)
        denom = jnp.sum(e, axis=-1, keepdims=True)
        o_ref[...] = e / denom

    return kernel


# --------------------------------- wrapper ----------------------------------


def mlp_forward(x, w_all, p_all, *, h_sizes):
    """x: (N, h_sizes[0]) f32
       w_all: (L, max_fin, max_fout) f32, layer k valid in [:fin_k, :fout_k]
       p_all: (L, 3, max_fout) f32, rows = [bias, gamma, beta]
    """
    h_sizes = tuple(h_sizes)
    n = x.shape[0]
    f_out = h_sizes[-1]

    # Sanity: everything (double-buffered inputs + output + activations) must
    # be comfortably VMEM-resident for the gridless design.
    resident_bytes = 4 * 2 * (x.size + w_all.size + p_all.size + n * f_out
                              + n * max(h_sizes))
    assert resident_bytes < VMEM_LIMIT_BYTES, "gridless MLP exceeds VMEM budget"

    vmem_spec = pl.BlockSpec(memory_space=pltpu.MemorySpace.VMEM)
    return pl.pallas_call(
        _make_mlp_kernel(h_sizes),
        out_shape=jax.ShapeDtypeStruct((n, f_out), jnp.float32),
        in_specs=[vmem_spec, vmem_spec, vmem_spec],
        out_specs=vmem_spec,
        compiler_params=pltpu.CompilerParams(
            vmem_limit_bytes=VMEM_LIMIT_BYTES),
    )(x, w_all, p_all)


# --------------------------- parameter init ---------------------------------


def init_mlp_params(key, h_sizes):
    """Deterministic init mirroring torch defaults (uniform +/- 1/sqrt(fan_in),
    BN gamma=1, beta=0). All layers packed into two padded buffers; weights
    stored pre-transposed as (F_in, F_out)."""
    h_sizes = tuple(h_sizes)
    n_layers = len(h_sizes) - 1
    max_fin = max(h_sizes[:-1])
    max_fout = max(h_sizes[1:])

    w_all = jnp.zeros((n_layers, max_fin, max_fout), jnp.float32)
    p_all = jnp.zeros((n_layers, 3, max_fout), jnp.float32)

    for k in range(n_layers):
        fan_in, fan_out = h_sizes[k], h_sizes[k + 1]
        key, kw, kb = jax.random.split(key, 3)
        bound = 1.0 / jnp.sqrt(fan_in)
        w = jax.random.uniform(kw, (fan_in, fan_out), jnp.float32, -bound, bound)
        b = jax.random.uniform(kb, (fan_out,), jnp.float32, -bound, bound)
        gamma = jnp.ones((fan_out,), jnp.float32)
        beta = jnp.zeros((fan_out,), jnp.float32)
        w_all = w_all.at[k, :fan_in, :fan_out].set(w)
        p_all = p_all.at[k, 0, :fan_out].set(b)
        p_all = p_all.at[k, 1, :fan_out].set(gamma)
        p_all = p_all.at[k, 2, :fan_out].set(beta)

    return w_all, p_all


# ------------------------------ reference -----------------------------------


def mlp_reference(x, w_all, p_all, h_sizes):
    """Plain-JAX reference with the canonical BN formulation."""
    h_sizes = tuple(h_sizes)
    h = x
    for k in range(len(h_sizes) - 1):
        fin, fout = h_sizes[k], h_sizes[k + 1]
        w = w_all[k, :fin, :fout]
        b = p_all[k, 0, :fout]
        g = p_all[k, 1, :fout]
        beta = p_all[k, 2, :fout]
        h = jnp.maximum(h @ w + b, 0.0)
        mean = jnp.mean(h, axis=0, keepdims=True)
        var = jnp.mean((h - mean) ** 2, axis=0, keepdims=True)
        h = (h - mean) / jnp.sqrt(var + BN_EPS) * g + beta
    return jax.nn.softmax(h, axis=-1)


# --------------------------------- main --------------------------------------

if __name__ == "__main__":
    h_sizes = (16, 32, 8)   # MLP([16, 32, 8]): two Linear+ReLU+BN blocks
    batch = 8

    key = jax.random.PRNGKey(0)
    key, kx = jax.random.split(key)
    x = jax.random.normal(kx, (batch, h_sizes[0]), jnp.float32)

    w_all, p_all = init_mlp_params(key, h_sizes)

    fwd = jax.jit(functools.partial(mlp_forward, h_sizes=h_sizes))
    out = jax.block_until_ready(fwd(x, w_all, p_all))

    # sanity: shape, rows sum to ~1 (exact division), match pure-JAX reference.
    assert out.shape == (batch, h_sizes[-1])
    assert jnp.allclose(jnp.sum(out, axis=-1), 1.0, atol=1e-4)
    ref = mlp_reference(x, w_all, p_all, h_sizes)
    assert jnp.allclose(out, ref, atol=1e-4, rtol=1e-4)

    print("KERNEL_OK")
</pallas_src>

<mosaic_0001>
module attributes {stable_mosaic.version = 11 : i64} {
  func.func @kernel(%arg0: memref<8x16xf32, #tpu.memory_space<vmem>>, %arg1: memref<2x32x32xf32, #tpu.memory_space<vmem>>, %arg2: memref<2x3x32xf32, #tpu.memory_space<vmem>>, %arg3: memref<8x8xf32, #tpu.memory_space<vmem>>) attributes {dimension_semantics = [], scalar_prefetch = 0 : i64, scratch_operands = 0 : i64, tpu.core_type = #tpu.core_type<tc>} {
    %c0 = arith.constant 0 : index
    %c0_0 = arith.constant 0 : index
    %0 = vector.load %arg0[%c0, %c0_0] : memref<8x16xf32, #tpu.memory_space<vmem>>, vector<8x16xf32>
    %c0_1 = arith.constant 0 : index
    %c0_2 = arith.constant 0 : index
    %c0_3 = arith.constant 0 : index
    %1 = vector.load %arg1[%c0_1, %c0_2, %c0_3] : memref<2x32x32xf32, #tpu.memory_space<vmem>>, vector<1x32x32xf32>
    %2 = vector.shape_cast %1 : vector<1x32x32xf32> to vector<32x32xf32>
    %c0_4 = arith.constant 0 : index
    %c0_5 = arith.constant 0 : index
    %c0_6 = arith.constant 0 : index
    %3 = vector.load %arg2[%c0_4, %c0_5, %c0_6] : memref<2x3x32xf32, #tpu.memory_space<vmem>>, vector<1x3x32xf32>
    %4 = vector.shape_cast %3 : vector<1x3x32xf32> to vector<3x32xf32>
    %5 = vector.extract_strided_slice %2 {offsets = [0, 0], sizes = [16, 32], strides = [1, 1]} : vector<32x32xf32> to vector<16x32xf32>
    %6 = vector.extract_strided_slice %4 {offsets = [0, 0], sizes = [1, 32], strides = [1, 1]} : vector<3x32xf32> to vector<1x32xf32>
    %7 = vector.extract_strided_slice %4 {offsets = [1, 0], sizes = [1, 32], strides = [1, 1]} : vector<3x32xf32> to vector<1x32xf32>
    %8 = vector.extract_strided_slice %4 {offsets = [2, 0], sizes = [1, 32], strides = [1, 1]} : vector<3x32xf32> to vector<1x32xf32>
    %cst = arith.constant dense<0.000000e+00> : vector<8x32xf32>
    %9 = tpu.matmul %0, %5, %cst {dimension_numbers = #tpu.dot_dimension_numbers<[1], [0], [0], [1], [0, 0, 1, 1], [], []>} : vector<8x16xf32>, vector<16x32xf32>, vector<8x32xf32> -> vector<8x32xf32>
    %10 = vector.broadcast %6 : vector<1x32xf32> to vector<8x32xf32>
    %11 = arith.addf %9, %10 : vector<8x32xf32>
    %cst_7 = arith.constant 0.000000e+00 : f32
    %12 = vector.broadcast %cst_7 : f32 to vector<8x32xf32>
    %13 = arith.maximumf %11, %12 : vector<8x32xf32>
    %cst_8 = arith.constant dense<0.000000e+00> : vector<32xf32>
    %14 = vector.multi_reduction <add>, %13, %cst_8 [0] : vector<8x32xf32> to vector<32xf32>
    %15 = vector.shape_cast %14 : vector<32xf32> to vector<1x32xf32>
    %cst_9 = arith.constant 8.000000e+00 : f32
    %16 = vector.broadcast %cst_9 : f32 to vector<1x32xf32>
    %17 = arith.divf %15, %16 : vector<1x32xf32>
    %18 = arith.mulf %13, %13 : vector<8x32xf32>
    %cst_10 = arith.constant dense<0.000000e+00> : vector<32xf32>
    %19 = vector.multi_reduction <add>, %18, %cst_10 [0] : vector<8x32xf32> to vector<32xf32>
    %20 = vector.shape_cast %19 : vector<32xf32> to vector<1x32xf32>
    %cst_11 = arith.constant 8.000000e+00 : f32
    %21 = vector.broadcast %cst_11 : f32 to vector<1x32xf32>
    %22 = arith.divf %20, %21 : vector<1x32xf32>
    %23 = arith.mulf %17, %17 : vector<1x32xf32>
    %24 = arith.subf %22, %23 : vector<1x32xf32>
    %cst_12 = arith.constant 0.000000e+00 : f32
    %25 = vector.broadcast %cst_12 : f32 to vector<1x32xf32>
    %26 = arith.maximumf %24, %25 : vector<1x32xf32>
    %cst_13 = arith.constant 9.99999974E-6 : f32
    %27 = vector.broadcast %cst_13 : f32 to vector<1x32xf32>
    %28 = arith.addf %26, %27 : vector<1x32xf32>
    %29 = math.rsqrt %28 : vector<1x32xf32>
    %30 = arith.mulf %7, %29 : vector<1x32xf32>
    %31 = arith.mulf %17, %30 : vector<1x32xf32>
    %32 = arith.subf %8, %31 : vector<1x32xf32>
    %33 = vector.broadcast %30 : vector<1x32xf32> to vector<8x32xf32>
    %34 = arith.mulf %13, %33 : vector<8x32xf32>
    %35 = vector.broadcast %32 : vector<1x32xf32> to vector<8x32xf32>
    %36 = arith.addf %34, %35 : vector<8x32xf32>
    %c1 = arith.constant 1 : index
    %c0_14 = arith.constant 0 : index
    %c0_15 = arith.constant 0 : index
    %37 = vector.load %arg1[%c1, %c0_14, %c0_15] : memref<2x32x32xf32, #tpu.memory_space<vmem>>, vector<1x32x32xf32>
    %38 = vector.shape_cast %37 : vector<1x32x32xf32> to vector<32x32xf32>
    %c1_16 = arith.constant 1 : index
    %c0_17 = arith.constant 0 : index
    %c0_18 = arith.constant 0 : index
    %39 = vector.load %arg2[%c1_16, %c0_17, %c0_18] : memref<2x3x32xf32, #tpu.memory_space<vmem>>, vector<1x3x32xf32>
    %40 = vector.shape_cast %39 : vector<1x3x32xf32> to vector<3x32xf32>
    %41 = vector.extract_strided_slice %38 {offsets = [0, 0], sizes = [32, 8], strides = [1, 1]} : vector<32x32xf32> to vector<32x8xf32>
    %42 = vector.extract_strided_slice %40 {offsets = [0, 0], sizes = [1, 8], strides = [1, 1]} : vector<3x32xf32> to vector<1x8xf32>
    %43 = vector.extract_strided_slice %40 {offsets = [1, 0], sizes = [1, 8], strides = [1, 1]} : vector<3x32xf32> to vector<1x8xf32>
    %44 = vector.extract_strided_slice %40 {offsets = [2, 0], sizes = [1, 8], strides = [1, 1]} : vector<3x32xf32> to vector<1x8xf32>
    %cst_19 = arith.constant dense<0.000000e+00> : vector<8x8xf32>
    %45 = tpu.matmul %36, %41, %cst_19 {dimension_numbers = #tpu.dot_dimension_numbers<[1], [0], [0], [1], [0, 0, 1, 1], [], []>} : vector<8x32xf32>, vector<32x8xf32>, vector<8x8xf32> -> vector<8x8xf32>
    %46 = vector.broadcast %42 : vector<1x8xf32> to vector<8x8xf32>
    %47 = arith.addf %45, %46 : vector<8x8xf32>
    %cst_20 = arith.constant 0.000000e+00 : f32
    %48 = vector.broadcast %cst_20 : f32 to vector<8x8xf32>
    %49 = arith.maximumf %47, %48 : vector<8x8xf32>
    %cst_21 = arith.constant dense<0.000000e+00> : vector<8xf32>
    %50 = vector.multi_reduction <add>, %49, %cst_21 [0] : vector<8x8xf32> to vector<8xf32>
    %51 = vector.shape_cast %50 : vector<8xf32> to vector<1x8xf32>
    %cst_22 = arith.constant 8.000000e+00 : f32
    %52 = vector.broadcast %cst_22 : f32 to vector<1x8xf32>
    %53 = arith.divf %51, %52 : vector<1x8xf32>
    %54 = arith.mulf %49, %49 : vector<8x8xf32>
    %cst_23 = arith.constant dense<0.000000e+00> : vector<8xf32>
    %55 = vector.multi_reduction <add>, %54, %cst_23 [0] : vector<8x8xf32> to vector<8xf32>
    %56 = vector.shape_cast %55 : vector<8xf32> to vector<1x8xf32>
    %cst_24 = arith.constant 8.000000e+00 : f32
    %57 = vector.broadcast %cst_24 : f32 to vector<1x8xf32>
    %58 = arith.divf %56, %57 : vector<1x8xf32>
    %59 = arith.mulf %53, %53 : vector<1x8xf32>
    %60 = arith.subf %58, %59 : vector<1x8xf32>
    %cst_25 = arith.constant 0.000000e+00 : f32
    %61 = vector.broadcast %cst_25 : f32 to vector<1x8xf32>
    %62 = arith.maximumf %60, %61 : vector<1x8xf32>
    %cst_26 = arith.constant 9.99999974E-6 : f32
    %63 = vector.broadcast %cst_26 : f32 to vector<1x8xf32>
    %64 = arith.addf %62, %63 : vector<1x8xf32>
    %65 = math.rsqrt %64 : vector<1x8xf32>
    %66 = arith.mulf %43, %65 : vector<1x8xf32>
    %67 = arith.mulf %53, %66 : vector<1x8xf32>
    %68 = arith.subf %44, %67 : vector<1x8xf32>
    %69 = vector.broadcast %66 : vector<1x8xf32> to vector<8x8xf32>
    %70 = arith.mulf %49, %69 : vector<8x8xf32>
    %71 = vector.broadcast %68 : vector<1x8xf32> to vector<8x8xf32>
    %72 = arith.addf %70, %71 : vector<8x8xf32>
    %cst_27 = arith.constant dense<0xFF800000> : vector<8xf32>
    %73 = vector.multi_reduction <maximumf>, %72, %cst_27 [1] : vector<8x8xf32> to vector<8xf32>
    %74 = vector.shape_cast %73 : vector<8xf32> to vector<8x1xf32>
    %75 = vector.broadcast %74 : vector<8x1xf32> to vector<8x8xf32>
    %76 = arith.subf %72, %75 : vector<8x8xf32>
    %77 = math.exp %76 : vector<8x8xf32>
    %cst_28 = arith.constant dense<0.000000e+00> : vector<8xf32>
    %78 = vector.multi_reduction <add>, %77, %cst_28 [1] : vector<8x8xf32> to vector<8xf32>
    %79 = vector.shape_cast %78 : vector<8xf32> to vector<8x1xf32>
    %80 = vector.broadcast %79 : vector<8x1xf32> to vector<8x8xf32>
    %81 = arith.divf %77, %80 : vector<8x8xf32>
    %c0_29 = arith.constant 0 : index
    %c0_30 = arith.constant 0 : index
    %82 = vector.load %arg3[%c0_29, %c0_30] : memref<8x8xf32, #tpu.memory_space<vmem>>, vector<8x8xf32>
    tpu.vector_store %arg3[%c0_29, %c0_30], %81 {strides = array<i32>} : memref<8x8xf32, #tpu.memory_space<vmem>>, vector<8x8xf32>,
    return
  }
}

</mosaic_0001>

<bundles_post_ra>
// kernel: mlp_forward.1
= control target key start
LH: loop header
LB: loop body
LE: loop exit
PB: predicated region body
PF: predicated region fallthrough
CT: control target
= control target key end

     0   :  { %8 = vsyncpa [#allocation3], 0  ;;  %s344_s0 = inlined_call_operand.vmem [shape: f32[8,16], index: 0, kind: input, shape index: {}]   ;;  %s345_s1 = inlined_call_operand.hbm [shape: f32[2,32,32], index: 1, kind: input, shape index: {}]   ;;  %s346_s2 = inlined_call_operand.vmem [shape: f32[2,3,32], index: 2, kind: input, shape index: {}]   ;;  %s347_s3 = inlined_call_operand.hbm [shape: f32[8,8], index: 3, kind: output, shape index: {}]  }
   0x1   :  { %9 = vsyncpa [#allocation4], 0  ;;  %s16_s14 = sshll.u32 %s345_s1, 4  ;;  %s296_s15 = smov [#allocation2]   ;;  %s17_s14 = int_to_ptr.hbm [resolvable:$true] %s16_s14 }
   0x2   :  { %s18_s16 = sshll.u32 %s296_s15, 4  ;;  %s297_s17 = smov 128   ;;  %s19_s16 = int_to_ptr.vmem [resolvable:$true] %s18_s16 }
   0x3   :  { %s298_s18 = smov 8  }
   0x4   :  { %24 = dma.hbm_to_vmem [thread:$0]  %s17_s14, 1024, %s19_s16, [#allocation3], %s297_s17, %s297_s17, %s298_s18  }
   0x5   :  { %292 = dma.done.wait [#allocation3], 1024  }
   0x6   :  { %293 = vsyncadd [#allocation3], 4294966272  ;;  %v33_v0 = vld [vmem:[#allocation2 + $0x8] sm:$0xff]  ;;  %v32_v1 = vld [vmem:[#allocation2] sm:$0xff]  ;;  %vm36_vm0 = vcmask 130048   ;;  %v299_v7 = vmov 8.0  }
   0x7   :  { %54 = vmatpush.msra.mxu0 %v33_v0  ;;  %v31_v2 = vld [vmem:[%s344_s0] sm:$0xff]  ;;  %v114_v3 = vld [vmem:[#allocation2 + $0x38] sm:$0xff]  ;;  %v113_v4 = vld [vmem:[#allocation2 + $0x30] sm:$0xff]  ;;  %234 = vrcp.f32 %v299_v7  ;;  %vm61_vm1 = vcmask 261120   ;;  %vm142_vm6 = vcmask 64512   ;;  %s216_s26 = sshll.u32 %s347_s3, 4  ;;  %s217_s26 = int_to_ptr.hbm [resolvable:$true] %s216_s26 }
   0x8   :  { %133 = vmatpush.msra.mxu1 %v114_v3  ;;  %v112_v5 = vld [vmem:[#allocation2 + $0x28] sm:$0xff]  ;;  %v111_v6 = vld [vmem:[#allocation2 + $0x20] sm:$0xff] }
   0x9   :  { %55 = vmatpush.msra.mxu0 %v32_v1  ;;  %v34_v8 = vld [vmem:[%s346_s2] sm:$0x7]  ;;  %v227_v55 = vld [vmem:[%s346_s2 + $0x4] sm:$0x7]  ;;  %s300_s2 = smov [#allocation5]  }
   0xa   :  { %226 = vmatmul.msk.f32.vlgmr.msra.gmra.mxu0 %vm36_vm0, %v31_v2  ;;  %134 = vmatpush.msra.mxu1 %v113_v4  ;;  %v35_v10 = vperm.slane %v34_v8, 0  ;;  %v117_v56 = vperm.slane %v227_v55, 0  ;;  %s214_s23 = sshll.u32 %s300_s2, 4  ;;  %s215_s23 = int_to_ptr.vmem [resolvable:$true] %s214_s23 }
   0xc   :  { %135 = vmatpush.msra.mxu1 %v112_v5 }
   0xd   :  { %v235_v9 = vpop.eup %234 }
   0xe   :  { %136 = vmatpush.msra.mxu1 %v111_v6  ;;  %v70_v11 = vmul.f32 8.0, %v235_v9  ;;  %vm74_vm2 = vweird.f32 %v235_v9 }
  0x10   :  { %v71_v15 = vsub.f32 1.0, %v70_v11 }
  0x12   :  { %v72_v19 = vmul.f32 %v235_v9, %v71_v15 }
  0x14   :  { %v73_v25 = vadd.f32 %v235_v9, %v72_v19 }
  0x16   :  { %v75_v30 = vsel %vm74_vm2, %v235_v9, %v73_v25 }
  0x87   :  { %v57_v12 = vpop.f32.mrf.mxu0 }
  0x88   :  { %v58_v13 = vadd.f32 %v57_v12, %v35_v10 }
  0x8a   :  { %v60_v14 = vmax.f32 %v58_v13, 0.0 }
  0x8c   :  { %v77_v16 = vmul.f32 %v60_v14, %v60_v14  ;;  %v62_v17 = vsel %vm61_vm1, %v60_v14, 0.0 }
  0x8d   :  { %v63_v18 = vrot.slane %v62_v17, 4 }
  0x8e   :  { %v78_v20 = vsel %vm61_vm1, %v77_v16, 0.0 }
  0x8f   :  { %v64_v21 = vadd.f32 %v63_v18, %v62_v17  ;;  %v79_v22 = vrot.slane %v78_v20, 4 }
  0x91   :  { %v65_v23 = vrot.slane %v64_v21, 2  ;;  %v80_v24 = vadd.f32 %v79_v22, %v78_v20 }
  0x93   :  { %v66_v26 = vadd.f32 %v65_v23, %v64_v21  ;;  %v81_v27 = vrot.slane %v80_v24, 2 }
  0x95   :  { %v67_v28 = vrot.slane %v66_v26, 1  ;;  %v82_v29 = vadd.f32 %v81_v27, %v80_v24 }
  0x97   :  { %v68_v31 = vadd.f32 %v67_v28, %v66_v26  ;;  %v83_v32 = vrot.slane %v82_v29, 1 }
  0x99   :  { %v76_v33 = vmul.f32 %v75_v30, %v68_v31  ;;  %v84_v34 = vadd.f32 %v83_v32, %v82_v29 }
  0x9b   :  { %v85_v35 = vmul.f32 %v84_v34, %v75_v30  ;;  %v86_v36 = vmul.f32 %v76_v33, %v76_v33 }
  0x9d   :  { %v87_v37 = vsub.f32 %v85_v35, %v86_v36 }
  0x9f   :  { %v88_v38 = vmax.f32 %v87_v37, 0.0 }
  0xa1   :  { %v89_v39 = vadd.f32 1e-05, %v88_v38 }
  0xa3   :  { %236 = vrsqrt.f32 %v89_v39  ;;  %vm96_vm4 = vweird.f32 %v89_v39 }
  0xa9   :  { %v237_v40 = vpop.eup %236 }
  0xaa   :  { %v91_v41 = vmul.f32 %v237_v40, %v89_v39  ;;  %vm97_vm3 = vweird.f32 %v237_v40 }
  0xab   :  { %vm98_vm5 = vmor %vm96_vm4, %vm97_vm3 }
  0xac   :  { %v92_v42 = vmul.f32 %v237_v40, %v91_v41 }
  0xae   :  { %v93_v43 = vmul.f32 0.5, %v92_v42 }
  0xb0   :  { %v94_v44 = vsub.f32 1.5, %v93_v43 }
  0xb2   :  { %v95_v45 = vmul.f32 %v237_v40, %v94_v44 }
  0xb4   :  { %v99_v46 = vsel %vm98_vm5, %v237_v40, %v95_v45 }
  0xb5   :  { %v100_v47 = vmul.f32 %v99_v46, %v34_v8 }
  0xb7   :  { %v101_v48 = vmul.f32 %v100_v47, %v76_v33  ;;  %v106_v50 = vperm.slane %v100_v47, 1 }
  0xb9   :  { %v103_v49 = vrot.slane %v101_v48, 7  ;;  %v107_v52 = vmul.f32 %v106_v50, %v60_v14 }
  0xbb   :  { %v105_v51 = vsub.f32 %v34_v8, %v103_v49 }
  0xbd   :  { %v108_v53 = vperm.slane %v105_v51, 2 }
  0xbf   :  { %v109_v54 = vadd.f32 %v108_v53, %v107_v52 }
  0xc1   :  { %228 = vmatmul.msk.f32.vlgmr.msra.gmra.mxu1 %vm61_vm1, %v109_v54 }
 0x13e   :  { %v138_v57 = vpop.f32.mrf.mxu1 }
 0x13f   :  { %v139_v58 = vadd.f32 %v138_v57, %v117_v56 }
 0x141   :  { %v141_v59 = vmax.f32 %v139_v58, 0.0 }
 0x143   :  { %v143_v60 = vsel %vm142_vm6, %v141_v59, 0.0  ;;  %v151_v61 = vmul.f32 %v141_v59, %v141_v59 }
 0x144   :  { %v144_v62 = vrot.slane %v143_v60, 4 }
 0x145   :  { %v152_v63 = vsel %vm142_vm6, %v151_v61, 0.0 }
 0x146   :  { %v145_v0 = vadd.f32 %v144_v62, %v143_v60  ;;  %v153_v1 = vrot.slane %v152_v63, 4 }
 0x148   :  { %v146_v2 = vrot.slane %v145_v0, 2  ;;  %v154_v3 = vadd.f32 %v153_v1, %v152_v63 }
 0x14a   :  { %v147_v4 = vadd.f32 %v146_v2, %v145_v0  ;;  %v155_v5 = vrot.slane %v154_v3, 2 }
 0x14c   :  { %v148_v6 = vrot.slane %v147_v4, 1  ;;  %v156_v7 = vadd.f32 %v155_v5, %v154_v3 }
 0x14e   :  { %v149_v8 = vadd.f32 %v148_v6, %v147_v4  ;;  %v157_v9 = vrot.slane %v156_v7, 1 }
 0x150   :  { %v150_v10 = vmul.f32 %v149_v8, %v75_v30  ;;  %v158_v11 = vadd.f32 %v157_v9, %v156_v7 }
 0x152   :  { %v159_v12 = vmul.f32 %v158_v11, %v75_v30  ;;  %v160_v13 = vmul.f32 %v150_v10, %v150_v10 }
 0x154   :  { %v161_v14 = vsub.f32 %v159_v12, %v160_v13 }
 0x156   :  { %v162_v15 = vmax.f32 %v161_v14, 0.0 }
 0x158   :  { %v163_v16 = vadd.f32 1e-05, %v162_v15 }
 0x15a   :  { %238 = vrsqrt.f32 %v163_v16  ;;  %vm170_vm8 = vweird.f32 %v163_v16 }
 0x160   :  { %v239_v17 = vpop.eup %238 }
 0x161   :  { %v165_v18 = vmul.f32 %v239_v17, %v163_v16  ;;  %vm171_vm7 = vweird.f32 %v239_v17 }
 0x162   :  { %vm172_vm9 = vmor %vm170_vm8, %vm171_vm7 }
 0x163   :  { %v166_v19 = vmul.f32 %v239_v17, %v165_v18 }
 0x165   :  { %v167_v20 = vmul.f32 0.5, %v166_v19 }
 0x167   :  { %v168_v21 = vsub.f32 1.5, %v167_v20 }
 0x169   :  { %v169_v22 = vmul.f32 %v239_v17, %v168_v21 }
 0x16b   :  { %v173_v23 = vsel %vm172_vm9, %v239_v17, %v169_v22 }
 0x16c   :  { %v174_v24 = vmul.f32 %v227_v55, %v173_v23 }
 0x16e   :  { %v175_v25 = vmul.f32 %v174_v24, %v150_v10  ;;  %v180_v27 = vperm.slane %v174_v24, 1 }
 0x170   :  { %v177_v26 = vrot.slane %v175_v25, 7  ;;  %v181_v29 = vmul.f32 %v180_v27, %v141_v59 }
 0x172   :  { %v179_v28 = vsub.f32 %v227_v55, %v177_v26 }
 0x174   :  { %v182_v30 = vperm.slane %v179_v28, 2 }
 0x176   :  { %v183_v31 = vadd.f32 %v182_v30, %v181_v29 }
 0x178   :  { %v184_v32 = vsel %vm142_vm6, %v183_v31, -inf }
 0x179   :  { %185 = vmax.xlane.f32.xlu0 %v184_v32 }
 0x1ec   :  { %v186_v33 = vpop.xlane.xlu0 %185 }
 0x1ed   :  { %v187_v34 = vsub.f32 %v183_v31, %v186_v33 }
 0x1ef   :  { %v188_v35 = vmul.f32 1.442695, %v187_v34 }
 0x1f1   :  { %240 = vpow2.f32 %v188_v35 }
 0x1f7   :  { %v241_v36 = vpop.eup %240 }
 0x1f8   :  { %v190_v37 = vsel %vm142_vm6, %v241_v36, 0.0 }
 0x1f9   :  { %191 = vadd.xlane.f32.xlu0 %v190_v37 }
 0x26c   :  { %v192_v38 = vpop.xlane.xlu0 %191 }
 0x26d   :  { %242 = vrcp.f32 %v192_v38  ;;  %v204_v42 = vand.u32 2147483648, %v192_v38  ;;  %v202_v44 = vand.u32 2147483647, %v192_v38  ;;  %vm198_vm11 = vweird.f32 %v192_v38 }
 0x26f   :  { %v205_v46 = vor.u32 1.1754944e-38, %v204_v42  ;;  %vm203_vm13 = vcmp.eq.f32.partialorder %v202_v44, 8.507059e+37 }
 0x273   :  { %v243_v39 = vpop.eup %242 }
 0x274   :  { %v194_v40 = vmul.f32 %v243_v39, %v192_v38  ;;  %vm199_vm10 = vweird.f32 %v243_v39 }
 0x275   :  { %vm200_vm12 = vmor %vm198_vm11, %vm199_vm10 }
 0x276   :  { %v195_v41 = vsub.f32 1.0, %v194_v40 }
 0x278   :  { %v196_v43 = vmul.f32 %v243_v39, %v195_v41 }
 0x27a   :  { %v197_v45 = vadd.f32 %v243_v39, %v196_v43 }
 0x27c   :  { %v201_v47 = vsel %vm200_vm12, %v243_v39, %v197_v45 }
 0x27d   :  { %v206_v48 = vsel %vm203_vm13, %v205_v46, %v201_v47 }
 0x27e   :  { %v207_v49 = vmul.f32 %v241_v36, %v206_v48 }
 0x280   :  { %208 = vst.msk [vmem:[#allocation5] sm:$0xff] %vm142_vm6, %v207_v49 }
 0x281   :  { %219 = dma.vmem_to_hbm [thread:$0]  %s215_s23, 128, %s217_s26, [#allocation4]  }
 0x282   :  { %294 = dma.done.wait [#allocation4], 128  }
 0x283   :  { %295 = vsyncadd [#allocation4], 4294967168 }
 0x284   :  { %224 = vsyncpa [#allocation3], 1 }
 0x285   :  { %225 = vsyncpa [#allocation4], 1 }

</bundles_post_ra>
